<compile_context>
chip_gen: v7x
topology: tpu7x:2x2x1
jax: 0.10.0
libtpu: 0.0.40
codegen_flags: <defaults>
</compile_context>

<pallas_src>
import functools

import jax
import jax.numpy as jnp
from jax.experimental import pallas as pl
from jax.experimental.pallas import tpu as pltpu


def _dice_sums_kernel(score_ref, target_ref, out_ref, i_acc, s_acc, t_acc, *,
                      apply_softmax, c_rows, pack_k, block_n, row_len,
                      tiles_per_split, maybe_masked):
    # score_ref : (1, c_rows, TN) logits (native dtype), c_rows = C * pack_k
    # target_ref: (1, pack_k, TN) integer labels (native narrow dtype)
    # out_ref   : (1, 1, c_rows, 3) per-(batch, split) sums:
    #             [:,0]=sum(s*onehot)  [:,1]=sum(s^2)  [:,2]=sum(onehot)
    # i/s/t_acc : (c_rows, 1) f32 VMEM accumulators (persist over the tile loop)
    p = pl.program_id(1)
    n = pl.program_id(2)
    t = p * tiles_per_split + n          # global lane-tile index (may be OOB)

    @pl.when(n == 0)
    def _():
        i_acc[...] = jnp.zeros_like(i_acc)
        s_acc[...] = jnp.zeros_like(s_acc)
        t_acc[...] = jnp.zeros_like(t_acc)

    score = score_ref[0].astype(jnp.float32)      # (c_rows, TN)
    tgt = target_ref[0].astype(jnp.int32)         # (pack_k, TN)
    tn = score.shape[-1]
    n_classes = c_rows // pack_k

    def class_reduce(x, op):
        # Packed layout: row r = class*pack_k + chunk.  A butterfly of cyclic
        # sublane rolls (shifts C*k/2 ... k) reduces over the stride-pack_k
        # coset, i.e. over the class axis, per (chunk, lane).  Requires
        # c_rows == 8 and power-of-two class count (guaranteed by the wrapper).
        shift = c_rows // 2
        while shift >= pack_k:
            x = op(x, pltpu.roll(x, shift=shift, axis=0))
            shift //= 2
        return x

    def make_onehot_f(valid):
        if pack_k > 1:
            parts = [(tgt == c).astype(jnp.float32) for c in range(n_classes)]
            oh = jnp.concatenate(parts, axis=0)                   # (c_rows, TN)
        else:
            row_class = jax.lax.broadcasted_iota(jnp.int32, (c_rows, tn), 0)
            oh = (tgt == row_class).astype(jnp.float32)           # broadcast
        if valid is not None:
            oh = jnp.where(valid, oh, 0.0)
        return oh

    def accumulate(valid):
        s = score
        if valid is not None:
            # Mask BEFORE softmax so garbage tail lanes can never produce NaN.
            s = jnp.where(valid, s, 0.0)
        if apply_softmax:
            if pack_k > 1:
                m = class_reduce(s, jnp.maximum)
                e = jnp.exp(s - m)
                d = class_reduce(e, jnp.add)
            else:
                m = jnp.max(s, axis=0, keepdims=True)
                e = jnp.exp(s - m)
                d = jnp.sum(e, axis=0, keepdims=True)
            s = e * pl.reciprocal(d, approx=True)
            if valid is not None:
                s = jnp.where(valid, s, 0.0)
        onehot_f = make_onehot_f(valid)
        i_acc[...] += jnp.sum(s * onehot_f, axis=-1, keepdims=True)
        s_acc[...] += jnp.sum(s * s, axis=-1, keepdims=True)
        t_acc[...] += jnp.sum(onehot_f, axis=-1, keepdims=True)

    if maybe_masked:
        needs_mask = (t + 1) * block_n > row_len

        @pl.when(jnp.logical_not(needs_mask))
        def _():
            accumulate(None)

        @pl.when(needs_mask)
        def _():
            pos = t * block_n + jax.lax.broadcasted_iota(jnp.int32, (1, tn), 1)
            accumulate(pos < row_len)
    else:
        accumulate(None)

    @pl.when(n == pl.num_programs(2) - 1)
    def _():
        out_ref[0, 0] = jnp.concatenate(
            [i_acc[...], s_acc[...], t_acc[...]], axis=-1)


def dice_loss(inputs, target, n_classes, weight=None, softmax=False,
              block_n=None):
    """DiceLoss.forward.  inputs: (B, C, H, W) logits, target: (B, 1, H, W)."""
    B, C, H, W = inputs.shape
    assert C == n_classes, "predict & target shape do not match"
    hw = H * W

    # Labels stay in their native integer dtype (pass int8/uint8 for least HBM
    # traffic); only non-integer labels are cast.
    if not jnp.issubdtype(target.dtype, jnp.integer):
        target = target.astype(jnp.int32)

    # Sublane packing: fold k = 8 // C of the spatial axis into the sublane axis
    # so f32 vregs are fully used for small C (power-of-two C only, so the
    # in-kernel roll butterfly is exact).
    if C in (1, 2, 4) and hw % (8 // C) == 0:
        pack_k = 8 // C
    else:
        pack_k = 1
    c_rows = C * pack_k
    row_len = hw // pack_k

    # Free reshapes only (contiguous splits -> no transpose, no extra HBM pass).
    score3d = inputs.reshape(B, c_rows, row_len)
    tgt3d = target.reshape(B, pack_k, row_len)

    score_bytes = jnp.dtype(inputs.dtype).itemsize
    tgt_bytes = jnp.dtype(target.dtype).itemsize
    per_col = c_rows * score_bytes + pack_k * tgt_bytes   # HBM bytes per lane col

    # VMEM-budgeted lane tile (double-buffered inputs <= ~24 MiB), capped so the
    # working set fits v7x's 64 MiB VMEM even for large class counts.
    if block_n is None:
        budget = 24 << 20
        block_n = (budget // (2 * per_col)) // 128 * 128
        block_n = max(128, min(block_n, 65536))
    block_n = min(block_n, pl.cdiv(row_len, 128) * 128)
    block_n = max(128, pl.cdiv(block_n, 128) * 128)

    n_tiles = pl.cdiv(row_len, block_n)
    # Give the second TensorCore (v7x) work when the batch axis can't: split the
    # lane-tile reduction into a parallel axis for B == 1.
    split = 2 if (B == 1 and n_tiles >= 2) else 1
    tiles_per_split = pl.cdiv(n_tiles, split)
    maybe_masked = (split * tiles_per_split * block_n) != row_len

    vmem_limit = int(min(2 * per_col * block_n + (8 << 20), 56 << 20))

    kernel = functools.partial(
        _dice_sums_kernel, apply_softmax=softmax, c_rows=c_rows, pack_k=pack_k,
        block_n=block_n, row_len=row_len, tiles_per_split=tiles_per_split,
        maybe_masked=maybe_masked)

    def in_map(b, p, n):
        # Clamp tiles past the end (only possible when split > 1); they are
        # fully masked inside the kernel so the re-read data contributes zero.
        t = jnp.minimum(p * tiles_per_split + n, n_tiles - 1)
        return (b, 0, t)

    sums = pl.pallas_call(
        kernel,
        out_shape=jax.ShapeDtypeStruct((B, split, c_rows, 3), jnp.float32),
        grid_spec=pltpu.PrefetchScalarGridSpec(
            num_scalar_prefetch=0,
            grid=(B, split, tiles_per_split),
            in_specs=[
                pl.BlockSpec((1, c_rows, block_n), in_map),
                pl.BlockSpec((1, pack_k, block_n), in_map),
            ],
            out_specs=pl.BlockSpec((1, 1, c_rows, 3),
                                   lambda b, p, n: (b, p, 0, 0)),
            scratch_shapes=[
                pltpu.VMEM((c_rows, 1), jnp.float32),
                pltpu.VMEM((c_rows, 1), jnp.float32),
                pltpu.VMEM((c_rows, 1), jnp.float32),
            ],
        ),
        compiler_params=pltpu.CompilerParams(
            dimension_semantics=("parallel", "parallel", "arbitrary"),
            vmem_limit_bytes=vmem_limit),
    )(score3d, tgt3d)

    # Combine per-(batch, split, chunk) partial sums, then the tiny per-class
    # dice in plain JAX.
    sums = sums.reshape(B * split, C, pack_k, 3).sum(axis=(0, 2))   # (C, 3)
    inter, ssq, tsq = sums[:, 0], sums[:, 1], sums[:, 2]
    smooth = 1e-10
    dice = 1.0 - inter / (ssq + tsq + smooth)        # per-class dice loss
    if weight is None:
        weight = jnp.ones((n_classes,), jnp.float32)
    else:
        weight = jnp.asarray(weight, jnp.float32)
    # TODO(synk): the PyTorch module also builds a host-side `class_wise_dice`
    # list via .item(); it is diagnostic-only (not returned), so it is omitted.
    return jnp.sum(dice * weight) / n_classes


def _dice_loss_ref(inputs, target, n_classes, weight=None, softmax=False):
    """Pure-JAX reference mirroring the PyTorch module (sanity check)."""
    inputs = inputs.astype(jnp.float32)
    if softmax:
        inputs = jax.nn.softmax(inputs, axis=1)
    onehot = jnp.concatenate(
        [(target == i).astype(jnp.float32) for i in range(n_classes)], axis=1)
    if weight is None:
        weight = [1.0] * n_classes
    loss = 0.0
    for i in range(n_classes):
        s, t = inputs[:, i], onehot[:, i]
        inter = jnp.sum(s * t)
        union = jnp.sum(s * s) + jnp.sum(t * t) + 1e-10
        loss = loss + (1.0 - inter / union) * weight[i]
    return loss / n_classes


if __name__ == "__main__":
    ks = jax.random.split(jax.random.PRNGKey(0), 8)
    B, C = 2, 4

    # (a, b) packed path (C=4 -> sublane pack k=2), exact tile coverage.
    x = jax.random.normal(ks[0], (B, C, 16, 16), dtype=jnp.float32)
    y = jax.random.randint(ks[1], (B, 1, 16, 16), 0, C, dtype=jnp.int32)
    out = jax.block_until_ready(dice_loss(x, y, C, softmax=False))
    assert jnp.allclose(out, _dice_loss_ref(x, y, C, softmax=False),
                        rtol=1e-5, atol=1e-5)
    out_sm = jax.block_until_ready(dice_loss(x, y, C, softmax=True))
    assert jnp.allclose(out_sm, _dice_loss_ref(x, y, C, softmax=True),
                        rtol=5e-3, atol=5e-3)

    # (c) tail-masked packed softmax + class weights.
    x2 = jax.random.normal(ks[2], (B, C, 10, 10), dtype=jnp.float32)
    y2 = jax.random.randint(ks[3], (B, 1, 10, 10), 0, C, dtype=jnp.int32)
    wgt = [0.5, 1.0, 2.0, 1.5]
    out2 = jax.block_until_ready(dice_loss(x2, y2, C, weight=wgt, softmax=True))
    assert jnp.allclose(out2, _dice_loss_ref(x2, y2, C, weight=wgt, softmax=True),
                        rtol=5e-3, atol=5e-3)

    # (d) B=1 split path + bf16 logits + uint8 labels + clamped/fully-masked tile.
    x3 = jax.random.normal(ks[4], (1, C, 24, 24),
                           dtype=jnp.float32).astype(jnp.bfloat16)
    y3 = jax.random.randint(ks[5], (1, 1, 24, 24), 0, C,
                            dtype=jnp.int32).astype(jnp.uint8)
    out3 = jax.block_until_ready(dice_loss(x3, y3, C, softmax=True, block_n=128))
    ref3 = _dice_loss_ref(x3.astype(jnp.float32), y3, C, softmax=True)
    assert jnp.allclose(out3, ref3, rtol=5e-3, atol=5e-3)

    # (e) generic (unpacked) path: class count not a power of two.
    C5 = 3
    x5 = jax.random.normal(ks[6], (B, C5, 16, 16), dtype=jnp.float32)
    y5 = jax.random.randint(ks[7], (B, 1, 16, 16), 0, C5, dtype=jnp.int32)
    out5 = jax.block_until_ready(dice_loss(x5, y5, C5, softmax=True))
    assert jnp.allclose(out5, _dice_loss_ref(x5, y5, C5, softmax=True),
                        rtol=5e-3, atol=5e-3)

    print("KERNEL_OK")
</pallas_src>

<mosaic_0001>
module attributes {stable_mosaic.version = 11 : i64} {
  func.func @_dice_sums_kernel(%arg0: i32, %arg1: i32, %arg2: i32, %arg3: memref<1x8x128xf32, #tpu.memory_space<vmem>>, %arg4: memref<1x2x128xi32, #tpu.memory_space<vmem>>, %arg5: memref<1x1x8x3xf32, #tpu.memory_space<vmem>>, %arg6: memref<8x1xf32, #tpu.memory_space<vmem>>, %arg7: memref<8x1xf32, #tpu.memory_space<vmem>>, %arg8: memref<8x1xf32, #tpu.memory_space<vmem>>) attributes {dimension_semantics = [#tpu.dimension_semantics<parallel>, #tpu.dimension_semantics<parallel>, #tpu.dimension_semantics<arbitrary>], iteration_bounds = array<i64: 2, 1, 1>, scalar_prefetch = 0 : i64, scratch_operands = 3 : i64, tpu.core_type = #tpu.core_type<tc>, window_params = [{transform_indices = @transform_0, window_bounds = array<i64: 1, 8, 128>}, {transform_indices = @transform_1, window_bounds = array<i64: 1, 2, 128>}, {transform_indices = @transform_2, window_bounds = array<i64: 1, 1, 8, 3>}]} {
    %c0_i32 = arith.constant 0 : i32
    %0 = arith.cmpi eq, %arg2, %c0_i32 : i32
    %1 = arith.extui %0 : i1 to i32
    %c0_i32_0 = arith.constant 0 : i32
    %2 = arith.cmpi ne, %1, %c0_i32_0 : i32
    scf.if %2 {
      %cst_23 = arith.constant 0.000000e+00 : f32
      %44 = vector.broadcast %cst_23 : f32 to vector<8x1xf32>
      %c0_24 = arith.constant 0 : index
      %c0_25 = arith.constant 0 : index
      %45 = vector.load %arg6[%c0_24, %c0_25] : memref<8x1xf32, #tpu.memory_space<vmem>>, vector<8x1xf32>
      tpu.vector_store %arg6[%c0_24, %c0_25], %44 {strides = array<i32>} : memref<8x1xf32, #tpu.memory_space<vmem>>, vector<8x1xf32>,
      %cst_26 = arith.constant 0.000000e+00 : f32
      %46 = vector.broadcast %cst_26 : f32 to vector<8x1xf32>
      %c0_27 = arith.constant 0 : index
      %c0_28 = arith.constant 0 : index
      %47 = vector.load %arg7[%c0_27, %c0_28] : memref<8x1xf32, #tpu.memory_space<vmem>>, vector<8x1xf32>
      tpu.vector_store %arg7[%c0_27, %c0_28], %46 {strides = array<i32>} : memref<8x1xf32, #tpu.memory_space<vmem>>, vector<8x1xf32>,
      %cst_29 = arith.constant 0.000000e+00 : f32
      %48 = vector.broadcast %cst_29 : f32 to vector<8x1xf32>
      %c0_30 = arith.constant 0 : index
      %c0_31 = arith.constant 0 : index
      %49 = vector.load %arg8[%c0_30, %c0_31] : memref<8x1xf32, #tpu.memory_space<vmem>>, vector<8x1xf32>
      tpu.vector_store %arg8[%c0_30, %c0_31], %48 {strides = array<i32>} : memref<8x1xf32, #tpu.memory_space<vmem>>, vector<8x1xf32>,
    } else {
    }
    %c0 = arith.constant 0 : index
    %c0_1 = arith.constant 0 : index
    %c0_2 = arith.constant 0 : index
    %3 = vector.load %arg3[%c0, %c0_1, %c0_2] : memref<1x8x128xf32, #tpu.memory_space<vmem>>, vector<1x8x128xf32>
    %4 = vector.shape_cast %3 : vector<1x8x128xf32> to vector<8x128xf32>
    %c0_3 = arith.constant 0 : index
    %c0_4 = arith.constant 0 : index
    %c0_5 = arith.constant 0 : index
    %5 = vector.load %arg4[%c0_3, %c0_4, %c0_5] : memref<1x2x128xi32, #tpu.memory_space<vmem>>, vector<1x2x128xi32>
    %6 = vector.shape_cast %5 : vector<1x2x128xi32> to vector<2x128xi32>
    %c0_i32_6 = arith.constant 0 : i32
    %7 = vector.broadcast %c0_i32_6 : i32 to vector<2x128xi32>
    %8 = arith.cmpi eq, %6, %7 : vector<2x128xi32>
    %9 = arith.extui %8 : vector<2x128xi1> to vector<2x128xi32>
    %10 = arith.sitofp %9 : vector<2x128xi32> to vector<2x128xf32>
    %c1_i32 = arith.constant 1 : i32
    %11 = vector.broadcast %c1_i32 : i32 to vector<2x128xi32>
    %12 = arith.cmpi eq, %6, %11 : vector<2x128xi32>
    %13 = arith.extui %12 : vector<2x128xi1> to vector<2x128xi32>
    %14 = arith.sitofp %13 : vector<2x128xi32> to vector<2x128xf32>
    %c2_i32 = arith.constant 2 : i32
    %15 = vector.broadcast %c2_i32 : i32 to vector<2x128xi32>
    %16 = arith.cmpi eq, %6, %15 : vector<2x128xi32>
    %17 = arith.extui %16 : vector<2x128xi1> to vector<2x128xi32>
    %18 = arith.sitofp %17 : vector<2x128xi32> to vector<2x128xf32>
    %c3_i32 = arith.constant 3 : i32
    %19 = vector.broadcast %c3_i32 : i32 to vector<2x128xi32>
    %20 = arith.cmpi eq, %6, %19 : vector<2x128xi32>
    %21 = arith.extui %20 : vector<2x128xi1> to vector<2x128xi32>
    %22 = arith.sitofp %21 : vector<2x128xi32> to vector<2x128xf32>
    %23 = tpu.concatenate %10, %14, %18, %22 in 0 : vector<2x128xf32>, vector<2x128xf32>, vector<2x128xf32>, vector<2x128xf32> -> vector<8x128xf32>
    %c0_7 = arith.constant 0 : index
    %c0_8 = arith.constant 0 : index
    %24 = vector.load %arg6[%c0_7, %c0_8] : memref<8x1xf32, #tpu.memory_space<vmem>>, vector<8x1xf32>
    %25 = arith.mulf %4, %23 : vector<8x128xf32>
    %cst = arith.constant dense<0.000000e+00> : vector<8xf32>
    %26 = vector.multi_reduction <add>, %25, %cst [1] : vector<8x128xf32> to vector<8xf32>
    %27 = vector.shape_cast %26 : vector<8xf32> to vector<8x1xf32>
    %28 = arith.addf %24, %27 : vector<8x1xf32>
    %c0_9 = arith.constant 0 : index
    %c0_10 = arith.constant 0 : index
    %29 = vector.load %arg6[%c0_9, %c0_10] : memref<8x1xf32, #tpu.memory_space<vmem>>, vector<8x1xf32>
    tpu.vector_store %arg6[%c0_9, %c0_10], %28 {strides = array<i32>} : memref<8x1xf32, #tpu.memory_space<vmem>>, vector<8x1xf32>,
    %c0_11 = arith.constant 0 : index
    %c0_12 = arith.constant 0 : index
    %30 = vector.load %arg7[%c0_11, %c0_12] : memref<8x1xf32, #tpu.memory_space<vmem>>, vector<8x1xf32>
    %31 = arith.mulf %4, %4 : vector<8x128xf32>
    %cst_13 = arith.constant dense<0.000000e+00> : vector<8xf32>
    %32 = vector.multi_reduction <add>, %31, %cst_13 [1] : vector<8x128xf32> to vector<8xf32>
    %33 = vector.shape_cast %32 : vector<8xf32> to vector<8x1xf32>
    %34 = arith.addf %30, %33 : vector<8x1xf32>
    %c0_14 = arith.constant 0 : index
    %c0_15 = arith.constant 0 : index
    %35 = vector.load %arg7[%c0_14, %c0_15] : memref<8x1xf32, #tpu.memory_space<vmem>>, vector<8x1xf32>
    tpu.vector_store %arg7[%c0_14, %c0_15], %34 {strides = array<i32>} : memref<8x1xf32, #tpu.memory_space<vmem>>, vector<8x1xf32>,
    %c0_16 = arith.constant 0 : index
    %c0_17 = arith.constant 0 : index
    %36 = vector.load %arg8[%c0_16, %c0_17] : memref<8x1xf32, #tpu.memory_space<vmem>>, vector<8x1xf32>
    %cst_18 = arith.constant dense<0.000000e+00> : vector<8xf32>
    %37 = vector.multi_reduction <add>, %23, %cst_18 [1] : vector<8x128xf32> to vector<8xf32>
    %38 = vector.shape_cast %37 : vector<8xf32> to vector<8x1xf32>
    %39 = arith.addf %36, %38 : vector<8x1xf32>
    %c0_19 = arith.constant 0 : index
    %c0_20 = arith.constant 0 : index
    %40 = vector.load %arg8[%c0_19, %c0_20] : memref<8x1xf32, #tpu.memory_space<vmem>>, vector<8x1xf32>
    tpu.vector_store %arg8[%c0_19, %c0_20], %39 {strides = array<i32>} : memref<8x1xf32, #tpu.memory_space<vmem>>, vector<8x1xf32>,
    %c0_i32_21 = arith.constant 0 : i32
    %41 = arith.cmpi eq, %arg2, %c0_i32_21 : i32
    %42 = arith.extui %41 : i1 to i32
    %c0_i32_22 = arith.constant 0 : i32
    %43 = arith.cmpi ne, %42, %c0_i32_22 : i32
    scf.if %43 {
      %c0_23 = arith.constant 0 : index
      %c0_24 = arith.constant 0 : index
      %44 = vector.load %arg6[%c0_23, %c0_24] : memref<8x1xf32, #tpu.memory_space<vmem>>, vector<8x1xf32>
      %c0_25 = arith.constant 0 : index
      %c0_26 = arith.constant 0 : index
      %45 = vector.load %arg7[%c0_25, %c0_26] : memref<8x1xf32, #tpu.memory_space<vmem>>, vector<8x1xf32>
      %c0_27 = arith.constant 0 : index
      %c0_28 = arith.constant 0 : index
      %46 = vector.load %arg8[%c0_27, %c0_28] : memref<8x1xf32, #tpu.memory_space<vmem>>, vector<8x1xf32>
      %47 = tpu.concatenate %44, %45, %46 in 1 : vector<8x1xf32>, vector<8x1xf32>, vector<8x1xf32> -> vector<8x3xf32>
      %c0_29 = arith.constant 0 : index
      %c0_30 = arith.constant 0 : index
      %c0_31 = arith.constant 0 : index
      %c0_32 = arith.constant 0 : index
      %48 = vector.load %arg5[%c0_29, %c0_30, %c0_31, %c0_32] : memref<1x1x8x3xf32, #tpu.memory_space<vmem>>, vector<1x1x8x3xf32>
      %49 = vector.shape_cast %48 : vector<1x1x8x3xf32> to vector<8x3xf32>
      %50 = vector.shape_cast %47 : vector<8x3xf32> to vector<1x1x8x3xf32>
      tpu.vector_store %arg5[%c0_29, %c0_30, %c0_31, %c0_32], %50 {strides = array<i32>} : memref<1x1x8x3xf32, #tpu.memory_space<vmem>>, vector<1x1x8x3xf32>,
    } else {
    }
    return
  }
  func.func @transform_0(%arg0: i32, %arg1: i32, %arg2: i32) -> (i32, i32, i32) {
    %c1_i32 = arith.constant 1 : i32
    %0 = arith.muli %arg1, %c1_i32 : i32
    %1 = arith.addi %0, %arg2 : i32
    %c0_i32 = arith.constant 0 : i32
    %2 = arith.minsi %1, %c0_i32 : i32
    %c0_i32_0 = arith.constant 0 : i32
    %c0_i32_1 = arith.constant 0 : i32
    return %arg0, %c0_i32_0, %2 : i32, i32, i32
  }
  func.func @transform_1(%arg0: i32, %arg1: i32, %arg2: i32) -> (i32, i32, i32) {
    %c1_i32 = arith.constant 1 : i32
    %0 = arith.muli %arg1, %c1_i32 : i32
    %1 = arith.addi %0, %arg2 : i32
    %c0_i32 = arith.constant 0 : i32
    %2 = arith.minsi %1, %c0_i32 : i32
    %c0_i32_0 = arith.constant 0 : i32
    %c0_i32_1 = arith.constant 0 : i32
    return %arg0, %c0_i32_0, %2 : i32, i32, i32
  }
  func.func @transform_2(%arg0: i32, %arg1: i32, %arg2: i32) -> (i32, i32, i32, i32) {
    %c0_i32 = arith.constant 0 : i32
    %c0_i32_0 = arith.constant 0 : i32
    %c0_i32_1 = arith.constant 0 : i32
    return %arg0, %arg1, %c0_i32, %c0_i32_0 : i32, i32, i32, i32
  }
}

</mosaic_0001>

<bundles_post_ra>
// kernel: tpu_custom_call.1
= control target key start
LH: loop header
LB: loop body
LE: loop exit
PB: predicated region body
PF: predicated region fallthrough
CT: control target
= control target key end

     0   :  { %7 = vsyncpa [#allocation6], 0  ;;  %s829_s0 = inlined_call_operand.hbm [shape: f32[2,8,128], index: 0, kind: input, shape index: {}]   ;;  %s830_s1 = inlined_call_operand.hbm [shape: s32[2,2,128], index: 1, kind: input, shape index: {}]   ;;  %s831_s2 = inlined_call_operand.vmem [shape: f32[2,1,8,3], index: 2, kind: output, shape index: {}]  }
   0x1   :  { %9 = vsyncpa [#allocation6 + $0x1], 0 }
   0x2   :  { %10 = vsyncpa [#allocation8], 0 }
   0x3   :  { %12 = vsyncpa [#allocation8 + $0x1], 0  ;;  %s655_s9 = smov 0   ;;  %s657_s10 = smov 0  }
   0x4   :  { %s659_s11 = smov 0   ;;  %s661_s12 = smov 0  }
   0x5   :  { %s663_s13 = smov 0   ;;  %s665_s14 = smov 0  }
   0x6 LB: > { %s438_s15 = sadd.s32 4294967295, %s633_s14   ;;  %s37_s16 = sadd.s32 1, %s629_s13  ;;  %s633_s14 = sphi %s665_s14, %s18_s14   ;;  %s629_s13 = sphi %s663_s13, %s845_s13   ;;  %s625_s12 = sphi %s661_s12, %s844_s12   ;;  %s621_s11 = sphi %s659_s11, %s843_s11   ;;  %s617_s10 = sphi %s657_s10, %s842_s10   ;;  %s613_s9 = sphi %s655_s9, %s841_s9  }
   0x7   : > { %p39_p0 = scmp.ge.s32.totalorder %s37_s16, 2  ;;  %s52_s17 = sadd.s32 1, %s621_s11 }
   0x8   : > { %p59_p1 = scmp.ne.s32.totalorder %s621_s11, %s617_s10  ;;  %p60_p2 = scmp.eq.s32.totalorder %s633_s14, 0 }
   0x9   : > { %s847_s16 = smov (%p39_p0, %s37_s16), 0  ;;  %p65_p4 = scmp.ne.s32.totalorder %s617_s10, %s613_s9 }
   0xa   : > { %p691_p3 = por %p60_p2, %p59_p1  ;;  %s47_s19 = ssub.s32 %s629_s13, %s847_s16 }
   0xb   : > { %p66_p5 = scmp.eq.s32.totalorder %s438_s15, 0  ;;  %p50_p6 = scmp.eq.s32.totalorder %s47_s19, 0 }
   0xc   : > { %p467_p8 = scmp.lt.s32.totalorder %s633_s14, 2  ;;  %s707_s22 = sand.u32 1, %s621_s11  }
   0xd   : > { %p698_p7 = por %p66_p5, %p65_p4  ;;  %s443_s23 = sshll.u32 %s629_s13, 7 }
   0xe   : > { %s704_s21 = scalar_select %p50_p6, %s621_s11, %s52_s17  }
   0xf   : > { %s834_s20 = scalar_select %p698_p7, 1, 0 }
  0x10   : > { %s442_s24 = sshll.u32 %s707_s22, 3  ;;  %s714_s27 = scalar_lea.hbm %s829_s0, %s443_s23 }
  0x11   : > { %s155_s28 = scalar_lea.vmem [#allocation5], %s442_s24  ;;  %p718_p9 = pnand %p467_p8, %p691_p3 }
  0x12   : > { %s166_s29 = sshll.u32 %s155_s28, 4  ;;  %s152_s3 = scalar_lea.sflag [#allocation6], %s707_s22  ;;  %s722_s29 = int_to_ptr.vmem [resolvable:$true] %s166_s29 }
  0x13   : > { %s519_s4 = scalar_lea.hbm %s714_s27, 128  ;;  %p521_p13 = pneg %p718_p9 }
  0x14   : > { %p520_p12 = scmp.ne.s32.totalorder %s714_s27, %s519_s4  ;;  %s524_s7 = scalar_lea.hbm %s829_s0, 256 }
  0x15   : > { %p525_p2 = scmp.lt.u32.totalorder %s714_s27, %s829_s0  ;;  %p526_p3 = scmp.lt.u32.totalorder %s524_s7, %s519_s4 }
  0x16   : > { %p522_p0 = pnand %p521_p13, %p520_p12  ;;  %p528_p5 = scmp.lt.u32.totalorder %s519_s4, %s714_s27 }
  0x17   : > { %p527_p4 = por %p526_p3, %p525_p2 }
  0x18   : > { %p523_p1 = pneg %p522_p0 }
  0x19   : > { %p529_p6 = por %p528_p5, %p527_p4 }
  0x1b   : > { %p530_p8 = pnand %p529_p6, %p523_p1 }
  0x1d   : > { %533 = shalt.err (!%p530_p8)
}
  0x1e   : > { %s534_s15 = scalar_lea.vmem %s722_s29, 128  ;;  %s635_s17 = smov [#allocation5]  }
  0x1f   : > { %p535_p12 = scmp.ne.s32.totalorder %s722_s29, %s534_s15  ;;  %s539_s18 = sshll.u32 %s635_s17, 4  ;;  %s540_s18 = int_to_ptr.vmem [resolvable:$false] %s539_s18 }
  0x20   : > { %s541_s19 = scalar_lea.vmem %s540_s18, 256  ;;  %p542_p11 = scmp.lt.s32.totalorder %s722_s29, %s540_s18 }
  0x21   : > { %p537_p0 = pnand %p535_p12, %p521_p13  ;;  %p543_p2 = scmp.lt.s32.totalorder %s541_s19, %s534_s15 }
  0x23   : > { %p538_p10 = pneg %p537_p0  ;;  %p544_p3 = por %p543_p2, %p542_p11 }
  0x25   : > { %p545_p4 = pnand %p544_p3, %p538_p10 }
  0x27   : > { %548 = shalt.err (!%p545_p4)
}
  0x28   : > { %463 = dma.hbm_to_vmem [thread:$0]  (!%p718_p9), %s714_s27, 128, %s722_s29, %s152_s3  }
  0x29   : > { %p836_p1 = scmp.lt.s32.totalorder %s633_s14, 3  ;;  %p837_p5 = scmp.ge.s32.totalorder %s633_s14, 1 }
  0x2a   : > { %s444_s24 = sshll.u32 %s707_s22, 1  ;;  %s445_s25 = sshll.u32 %s629_s13, 5 }
  0x2b   : > { %p756_p6 = pnand %p837_p5, %p836_p1  ;;  %s765_s4 = scalar_lea.hbm %s830_s1, %s445_s25 }
  0x2c   : > { %s177_s5 = scalar_lea.vmem [#allocation7], %s444_s24  ;;  %s174_s27 = scalar_lea.sflag [#allocation8], %s707_s22 }
  0x2d   : > { %s838_s23 = scalar_select %p756_p6, 1, 0 }
  0x2e   : > { %s188_s6 = sshll.u32 %s177_s5, 4  ;;  %s549_s29 = scalar_lea.hbm %s765_s4, 32  ;;  %s189_s6 = int_to_ptr.vmem [resolvable:$true] %s188_s6 }
  0x2f   : > { %p550_p10 = scmp.ne.s32.totalorder %s765_s4, %s549_s29  ;;  %s554_s8 = scalar_lea.hbm %s830_s1, 64 }
  0x30   : > { %p555_p12 = scmp.lt.u32.totalorder %s765_s4, %s830_s1  ;;  %p556_p0 = scmp.lt.u32.totalorder %s554_s8, %s549_s29 }
  0x31   : > { %p552_p11 = pnand %p550_p10, %p521_p13  ;;  %p558_p3 = scmp.lt.u32.totalorder %s549_s29, %s765_s4 }
  0x32   : > { %p557_p2 = por %p556_p0, %p555_p12 }
  0x33   : > { %p553_p8 = pneg %p552_p11 }
  0x34   : > { %p559_p4 = por %p558_p3, %p557_p2 }
  0x36   : > { %p560_p1 = pnand %p559_p4, %p553_p8 }
  0x38   : > { %563 = shalt.err (!%p560_p1)
}
  0x39   : > { %s564_s22 = scalar_lea.vmem %s189_s6, 32  ;;  %s636_s17 = smov [#allocation7]  }
  0x3a   : > { %p565_p5 = scmp.ne.s32.totalorder %s189_s6, %s564_s22  ;;  %s569_s18 = sshll.u32 %s636_s17, 4  ;;  %s570_s18 = int_to_ptr.vmem [resolvable:$false] %s569_s18 }
  0x3b   : > { %s571_s19 = scalar_lea.vmem %s570_s18, 64  ;;  %p572_p7 = scmp.lt.s32.totalorder %s189_s6, %s570_s18 }
  0x3c   : > { %p567_p10 = pnand %p565_p5, %p521_p13  ;;  %p573_p6 = scmp.lt.s32.totalorder %s571_s19, %s564_s22 }
  0x3e   : > { %p568_p11 = pneg %p567_p10  ;;  %p574_p0 = por %p573_p6, %p572_p7 }
  0x40   : > { %p575_p12 = pnand %p574_p0, %p568_p11 }
  0x42   : > { %578 = shalt.err (!%p575_p12)
}
  0x43   : > { %466 = dma.hbm_to_vmem [thread:$0]  (!%p718_p9), %s765_s4, 32, %s189_s6, %s174_s27  }
  0x44   : > { %p839_p8 = scmp.ne.s32.totalorder %s838_s23, 0 }
  0x45   : > { %s199_s24 = sand.u32 (!%p839_p8), 1, %s617_s10   ;;  %p840_p13 = scmp.ne.s32.totalorder (!%p839_p8), %s834_s20, 0 }
  0x46   : > { %197 = sbr.rel (%p839_p8) target bundleno = 358 (0x166), region = 28  ;;  %s447_s25 = sshll.u32 (!%p839_p8), %s199_s24, 3 }
  0x47   : > { %s200_s26 = scalar_lea.sflag (!%p839_p8), [#allocation6], %s199_s24  ;;  %s203_s28 = scalar_lea.vmem (!%p839_p8), [#allocation5], %s447_s25 }
  0x4d   : > { %604 = dma.done.wait (%p840_p13), %s200_s26, 128  }
  0x4e   : > { %606 = vsyncadd (%p840_p13), %s200_s26, 4294967168  ;;  %s448_s5 = sshll.u32 %s199_s24, 1  ;;  %s209_s29 = scalar_lea.sflag [#allocation8], %s199_s24 }
  0x4f   : > { %s212_s30 = scalar_lea.vmem [#allocation7], %s448_s5 }
  0x50   : > { %608 = dma.done.wait (%p840_p13), %s209_s29, 32  }
  0x51   : > { %610 = vsyncadd (%p840_p13), %s209_s29, 4294967264  ;;  %vm257_vm0 = vcmask 7168   ;;  %v637_v0 = vmov 0.0   ;;  %v261_v1 = vld [vmem:[%s203_s28] sm:$0xff]  ;;  %v262_v2 = vld [vmem:[%s212_s30] sm:$0x3] }
  0x52   : > { %259 = vst.msk [vmem:[#allocation3] sm:$0xff] %vm257_vm0, %v637_v0  ;;  %258 = vst.msk [vmem:[#allocation2] sm:$0xff] %vm257_vm0, %v637_v0  ;;  %vm284_vm1 = vcmask 1041408   ;;  %v298_v3 = vmul.f32 %v261_v1, %v261_v1  ;;  %vm263_vm2 = vcmp.eq.s32.totalorder %v262_v2, 0  ;;  %vm266_vm3 = vcmp.eq.s32.totalorder %v262_v2, 1  ;;  %s638_s20 = smov 1  }
  0x53   : > { %260 = vst.msk [vmem:[#allocation4] sm:$0xff] %vm257_vm0, %v637_v0  ;;  %vm269_vm4 = vcmp.eq.s32.totalorder %v262_v2, 2  ;;  %v450_v4 = vsel %vm263_vm2, 1.0, %v637_v0  ;;  %v451_v5 = vsel %vm266_vm3, 1.0, %v637_v0  ;;  %vm272_vm5 = vcmp.eq.s32.totalorder %v262_v2, 3  ;;  %s639_s23 = smov 2  }
  0x54   : > { %v452_v6 = vsel %vm269_vm4, 1.0, %v637_v0  ;;  %299 = vadd.xlane.f32.xlu0 %v298_v3  ;;  %v453_v7 = vsel %vm272_vm5, 1.0, %v637_v0  ;;  %v276_v8 = vrot.slane %v451_v5, 6  ;;  %vm286_vm6 = vcmask 1043456   ;;  %p246_p7 = scmp.lt.s32.totalorder %s625_s12, 1 }
  0x55   : > { %v279_v9 = vrot.slane %v452_v6, 4  ;;  %v282_v10 = vrot.slane %v453_v7, 2  ;;  %vm288_vm7 = vcmask 1045504   ;;  %vm323_vm8 = vcmask 15360  }
  0x56   : > { %v285_v11 = vsel %vm284_vm1, %v450_v4, %v276_v8  ;;  %s849_s12 = smov (!%p246_p7, %s625_s12), 1  ;;  %vm325_vm9 = vcmask 23552  }
  0x57   : > { %v287_v12 = vsel %vm286_vm6, %v285_v11, %v279_v9  ;;  %s449_s4 = sshll.u32 %s849_s12, 3 }
  0x58   : > { %v289_v13 = vsel %vm288_vm7, %v287_v12, %v282_v10  ;;  %s252_s3 = scalar_lea.vmem %s831_s2, %s449_s4 }
  0x59   : > { %304 = vadd.xlane.f32.xlu0 %v289_v13  ;;  %v291_v14 = vmul.f32 %v289_v13, %v261_v1  ;;  %v297_v15 = vld [vmem:[#allocation3] sm:$0xff]  ;;  %v290_v20 = vld [vmem:[#allocation2] sm:$0xff] }
  0x5a   : > { %v303_v18 = vld [vmem:[#allocation4] sm:$0xff] }
  0x5b   : > { %292 = vadd.xlane.f32.xlu1 %v291_v14 }
  0xe1   : > { %v300_v16 = vpop.xlane.xlu0 %299 }
  0xe2   : > { %v301_v17 = vadd.f32 %v300_v16, %v297_v15 }
  0xe4   : > { %302 = vst.msk [vmem:[#allocation3] sm:$0xff] %vm257_vm0, %v301_v17 }
  0xe6   : > { %v305_v19 = vpop.xlane.xlu0 %304 }
  0xe7   : > { %v306_v21 = vadd.f32 %v305_v19, %v303_v18 }
  0xe8   : > { %v293_v22 = vpop.xlane.xlu1 %292 }
  0xe9   : > { %307 = vst.msk [vmem:[#allocation4] sm:$0xff] %vm257_vm0, %v306_v21  ;;  %v294_v23 = vadd.f32 %v293_v22, %v290_v20 }
  0xeb   : > { %v312_v24 = vld [vmem:[#allocation3] sm:$0xff]  ;;  %296 = vst.msk [vmem:[#allocation2] sm:$0xff] %vm257_vm0, %v294_v23 }
  0xec   : > { %315 = vrot.lane.b32.xlu1 %v312_v24, %s638_s20 }
  0xf0   : > { %v313_v25 = vld [vmem:[#allocation4] sm:$0xff] }
  0xf1   : > { %319 = vrot.lane.b32.xlu0 %v313_v25, %s639_s23 }
  0xf2   : > { %v311_v27 = vld [vmem:[#allocation2] sm:$0xff] }
 0x15e   : > { %v316_v26 = vpop.permute.xlu1 %315 }
 0x15f   : > { %v322_v28 = vsel %vm257_vm0, %v311_v27, %v316_v26 }
 0x163   : > { %v320_v29 = vpop.permute.xlu0 %319 }
 0x164   : > { %v324_v30 = vsel %vm323_vm8, %v322_v28, %v320_v29 }
 0x165   : > { %326 = vst.msk [vmem:[%s252_s3] sm:$0xff] %vm325_vm9, %v324_v30 }
 0x166 PF: > { %s18_s14 = sadd.s32 1, %s633_s14   ;;  %s841_s9 = smov %s617_s10 }
 0x167   : > { %p15_p9 = scmp.ge.s32.totalorder %s18_s14, 4   ;;  %s842_s10 = smov %s621_s11 }
 0x168   : > { %s843_s11 = smov %s704_s21  ;;  %s844_s12 = smov %s629_s13 }
 0x169   : > { %s845_s13 = smov %s847_s16  ;;  %17 = sbr.rel (!%p15_p9) target bundleno = 6 (0x6), region = 89 }
 0x170   :  { %352 = vsyncpa [#allocation6], 1 }
 0x171   :  { %354 = vsyncpa [#allocation6 + $0x1], 1 }
 0x172   :  { %355 = vsyncpa [#allocation8], 1 }
 0x173   :  { %357 = vsyncpa [#allocation8 + $0x1], 1 }

</bundles_post_ra>
